<compile_context>
chip_gen: v5e
topology: v5e:2x2
jax: 0.10.0
libtpu: 0.0.40
codegen_flags: <defaults>
</compile_context>

<pallas_src>
import jax
import jax.numpy as jnp
from jax.experimental import pallas as pl
from jax.experimental.pallas import tpu as pltpu

_MiB = 1024 * 1024


# --------------------------------------------------------------------------
# Tile / VMEM sizing helpers
# --------------------------------------------------------------------------
def _vmem_capacity_bytes():
    """Physical VMEM per TensorCore; conservative (v7x, 64 MiB) default."""
    try:
        cap = int(pltpu.get_tpu_info().vmem_capacity_bytes)
        if cap > 0:
            return cap
    except Exception:
        pass
    return 64 * _MiB


def _vmem_limit_bytes(working_set_bytes, vmem_cap):
    """Scoped-VMEM limit: working set + headroom, clamped to the chip."""
    limit = max(working_set_bytes + 16 * _MiB, 32 * _MiB)
    limit = min(limit, vmem_cap - 8 * _MiB)
    limit = max(limit, working_set_bytes + 4 * _MiB)
    return int(min(limit, vmem_cap))


def _pick_tile_s(S, cap):
    """Largest lane-dense (multiple of 128) divisor of S within cap, else S."""
    if S % 128 != 0:
        return S                      # only the full dim is a legal lane block
    if S <= cap:
        return S
    best = 128
    d = 128
    while d <= cap:
        if S % d == 0:
            best = d
        d += 128
    return best


def _pick_tile_r(R, sub_min, max_rows, min_blocks=1):
    """Largest sublane-aligned divisor of R within max_rows (>= sub_min rows).

    If min_blocks > 1, cap the tile so the parallel R axis gets at least that
    many blocks whenever a legal smaller tile exists (v7x megacore)."""
    max_rows = max(int(max_rows), sub_min)

    def best_leq(cap):
        best = None
        d = sub_min
        lim = min(R, cap)
        while d <= lim:
            if R % d == 0:
                best = d
            d += sub_min
        return best

    tile = best_leq(max_rows)
    if tile is None:
        return R                      # full dim is always a legal block shape
    if min_blocks > 1 and R // tile < min_blocks:
        alt = best_leq(min(max_rows, R // min_blocks))
        if alt is not None:
            tile = alt
    return tile


# --------------------------------------------------------------------------
# Kernels
# --------------------------------------------------------------------------
def _make_row_sum_kernel(n, lane_aligned):
    """Pass 1: per-row sums of each x[i] over the S axis.

    refs = (x_0..x_{n-1}, out, acc) where
      x_i tile : (tile_R, tile_S)
      out block: (tile_R, n) f32, resident across the S ("arbitrary") axis
      acc      : (n, tile_R, 128) f32 VMEM scratch (lane-group partial sums)
    """

    def kernel(*refs):
        x_refs = refs[:n]
        out_ref = refs[n]
        acc_ref = refs[n + 1]
        s = pl.program_id(1)

        @pl.when(s == 0)
        def _init():
            acc_ref[...] = jnp.zeros_like(acc_ref)

        for i in range(n):
            x = x_refs[i][...].astype(jnp.float32)
            if lane_aligned:
                # VALU-only lane-group accumulation; defer the XLU reduce.
                groups = x.shape[1] // 128
                part = x[:, 0:128]
                for g in range(1, groups):
                    part = part + x[:, g * 128:(g + 1) * 128]
                acc_ref[i] = acc_ref[i] + part
            else:
                # S not lane-aligned (then tile_S == S, single S step):
                # reduce directly into lane 0 of the scratch.
                acc_ref[i, :, 0:1] = acc_ref[i, :, 0:1] + jnp.sum(
                    x, axis=-1, keepdims=True)

        @pl.when(s == pl.num_programs(1) - 1)
        def _finalize():
            for i in range(n):
                out_ref[:, i:i + 1] = jnp.sum(acc_ref[i], axis=-1, keepdims=True)

    return kernel


def _make_weighted_sum_kernel(n):
    """Pass 2: y = sum_i x[i] * W[:, i]  (per-row weights, f32 accumulate)."""

    def kernel(*refs):
        w_ref = refs[0]
        x_refs = refs[1:1 + n]
        o_ref = refs[1 + n]
        w = w_ref[...]                                        # (tile_R, n) f32
        acc = x_refs[0][...].astype(jnp.float32) * w[:, 0:1]
        for i in range(1, n):
            acc = acc + x_refs[i][...].astype(jnp.float32) * w[:, i:i + 1]
        o_ref[...] = acc.astype(o_ref.dtype)

    return kernel


# --------------------------------------------------------------------------
# Forward wrapper
# --------------------------------------------------------------------------
def sec_agg_forward(x_list, q_vec):
    """x_list: list of n (b, c, t, h, w) arrays; q_vec: (1, c). Returns (b, c, t, h, w)."""
    n = len(x_list)
    b, c, t, h, w = x_list[0].shape
    S = t * h * w
    R = b * c
    dtype = x_list[0].dtype
    itemsize = jnp.dtype(dtype).itemsize
    sub_min = {4: 8, 2: 16, 1: 32}.get(itemsize, 8)  # packed-dtype sublane minimum

    # Free reshapes (pure dimension collapse) -- no stacked HBM copy.
    xs = [xi.reshape(R, S) for xi in x_list]

    # ---- generation-aware tile budgeting ----------------------------------
    vmem_cap = _vmem_capacity_bytes()          # 64 MiB v7x / 128 MiB v5e,v6e
    budget = max(8 * _MiB, min(32 * _MiB, vmem_cap // 2 - 8 * _MiB))

    # Prefer the largest lane-dense tile_S while keeping room for >= sub_min rows.
    s_cap = max(128, budget // ((2 * (n + 1) * itemsize + 8) * sub_min))
    tile_S = _pick_tile_s(S, s_cap)
    lane_aligned = (tile_S % 128 == 0)

    # Per-row VMEM bytes (double-buffered tiles + f32 temporaries + scratch).
    row_bytes_1 = 2 * n * tile_S * itemsize + 2 * tile_S * 4 + n * 128 * 4
    row_bytes_2 = 2 * (n + 1) * tile_S * itemsize + 2 * tile_S * 4 + 4 * n * 4

    # Pass 1: S is the reduction ("arbitrary") axis, so R must give >= 2 blocks
    # for v7x's two TensorCores whenever a legal smaller tile exists.
    tile_R1 = _pick_tile_r(R, sub_min, budget // row_bytes_1, min_blocks=2)
    tile_R2 = _pick_tile_r(R, sub_min, budget // row_bytes_2, min_blocks=1)

    limit1 = _vmem_limit_bytes(tile_R1 * row_bytes_1, vmem_cap)
    limit2 = _vmem_limit_bytes(tile_R2 * row_bytes_2, vmem_cap)

    # ---- pass 1: per-row sums (one streamed read of each x[i]) ------------
    row_sums = pl.pallas_call(
        _make_row_sum_kernel(n, lane_aligned),
        out_shape=jax.ShapeDtypeStruct((R, n), jnp.float32),
        grid=(R // tile_R1, S // tile_S),
        in_specs=[pl.BlockSpec((tile_R1, tile_S), lambda r, s: (r, s))
                  for _ in range(n)],
        out_specs=pl.BlockSpec((tile_R1, n), lambda r, s: (r, 0)),
        scratch_shapes=[pltpu.VMEM((n, tile_R1, 128), jnp.float32)],
        compiler_params=pltpu.CompilerParams(
            dimension_semantics=("parallel", "arbitrary"),
            vmem_limit_bytes=limit1),
        cost_estimate=pl.CostEstimate(
            flops=n * R * S, transcendentals=0,
            bytes_accessed=n * R * S * itemsize + R * n * 4),
    )(*xs)

    # ---- tiny (b, n) projection + softmax (O(b*n) scalars, plain JAX) -----
    K = row_sums.reshape(b, c, n) / jnp.float32(S)            # means over (t, h, w)
    proj = jnp.einsum('bcn,c->bn', K, q_vec[0].astype(jnp.float32))   # (b, n)
    mx = jnp.max(proj, axis=1, keepdims=True)
    ex = jnp.exp(proj - mx)
    wts = ex / (jnp.sum(ex, axis=1, keepdims=True) + 1e-8)    # (b, n)
    W = jnp.repeat(wts, c, axis=0).astype(jnp.float32)        # (b*c, n) row weights

    # ---- pass 2: streaming weighted sum (one read + one write / element) --
    out2d = pl.pallas_call(
        _make_weighted_sum_kernel(n),
        out_shape=jax.ShapeDtypeStruct((R, S), dtype),
        grid=(R // tile_R2, S // tile_S),
        in_specs=[pl.BlockSpec((tile_R2, n), lambda r, s: (r, 0))]
                + [pl.BlockSpec((tile_R2, tile_S), lambda r, s: (r, s))
                   for _ in range(n)],
        out_specs=pl.BlockSpec((tile_R2, tile_S), lambda r, s: (r, s)),
        compiler_params=pltpu.CompilerParams(
            dimension_semantics=("parallel", "parallel"),
            vmem_limit_bytes=limit2),
        cost_estimate=pl.CostEstimate(
            flops=2 * n * R * S, transcendentals=0,
            bytes_accessed=(n + 1) * R * S * itemsize + R * n * 4),
    )(W, *xs)

    return out2d.reshape(b, c, t, h, w)


# --------------------------------------------------------------------------
# Pure-JAX reference (mirrors the PyTorch forward exactly)
# --------------------------------------------------------------------------
def sec_agg_reference(x_list, q_vec):
    n = len(x_list)
    b, c = x_list[0].shape[:2]
    K = jnp.stack([jnp.mean(xi.astype(jnp.float32), axis=(2, 3, 4))
                   for xi in x_list], axis=1)                         # (b, n, c)
    proj = (K.reshape(-1, c) @ q_vec.astype(jnp.float32).T).reshape(b, n, 1)
    mx = jnp.max(proj, axis=1, keepdims=True)
    pe = jnp.exp(proj - mx)
    norm = jnp.sum(pe, axis=1, keepdims=True)
    wt = (pe / (norm + 1e-8))[..., 0]                                 # (b, n)
    y = jnp.zeros_like(x_list[0], dtype=jnp.float32)
    for j in range(n):
        y = y + x_list[j].astype(jnp.float32) * wt[:, j][:, None, None, None, None]
    return y.astype(x_list[0].dtype)


if __name__ == "__main__":
    key = jax.random.PRNGKey(0)
    b, c, t, h, w = 2, 4, 4, 8, 8
    n_depens = 3
    emb_d = c

    k_q, *k_xs = jax.random.split(key, 1 + n_depens)
    # qVec init: uniform(-0.1, 0.1) as in the PyTorch module, deterministic here.
    q_vec = jax.random.uniform(k_q, (1, emb_d), minval=-0.1, maxval=0.1,
                               dtype=jnp.float32)
    x_list = [jax.random.normal(k, (b, c, t, h, w), dtype=jnp.float32)
              for k in k_xs]

    y = sec_agg_forward(x_list, q_vec)
    y = jax.block_until_ready(y)

    y_ref = sec_agg_reference(x_list, q_vec)
    assert y.shape == (b, c, t, h, w)
    assert jnp.allclose(y, y_ref, atol=1e-5, rtol=1e-5), "mismatch vs reference"

    print("KERNEL_OK")
</pallas_src>

<mosaic_0001>
module attributes {stable_mosaic.version = 11 : i64} {
  func.func @kernel(%arg0: i32, %arg1: i32, %arg2: memref<8x256xf32, #tpu.memory_space<vmem>>, %arg3: memref<8x256xf32, #tpu.memory_space<vmem>>, %arg4: memref<8x256xf32, #tpu.memory_space<vmem>>, %arg5: memref<8x3xf32, #tpu.memory_space<vmem>>, %arg6: memref<3x8x128xf32, #tpu.memory_space<vmem>>) attributes {dimension_semantics = [#tpu.dimension_semantics<parallel>, #tpu.dimension_semantics<arbitrary>], iteration_bounds = array<i64: 1, 1>, scalar_prefetch = 0 : i64, scratch_operands = 1 : i64, tpu.core_type = #tpu.core_type<tc>, window_params = [{transform_indices = @transform_0, window_bounds = array<i64: 8, 256>}, {transform_indices = @transform_1, window_bounds = array<i64: 8, 256>}, {transform_indices = @transform_2, window_bounds = array<i64: 8, 256>}, {transform_indices = @transform_3, window_bounds = array<i64: 8, 3>}]} {
    %c0_i32 = arith.constant 0 : i32
    %0 = arith.cmpi eq, %arg1, %c0_i32 : i32
    %1 = arith.extui %0 : i1 to i32
    %c0_i32_0 = arith.constant 0 : i32
    %2 = arith.cmpi ne, %1, %c0_i32_0 : i32
    scf.if %2 {
      %cst = arith.constant 0.000000e+00 : f32
      %36 = vector.broadcast %cst : f32 to vector<3x8x128xf32>
      %c0_24 = arith.constant 0 : index
      %c0_25 = arith.constant 0 : index
      %c0_26 = arith.constant 0 : index
      %37 = vector.load %arg6[%c0_24, %c0_25, %c0_26] : memref<3x8x128xf32, #tpu.memory_space<vmem>>, vector<3x8x128xf32>
      tpu.vector_store %arg6[%c0_24, %c0_25, %c0_26], %36 {strides = array<i32>} : memref<3x8x128xf32, #tpu.memory_space<vmem>>, vector<3x8x128xf32>,
    } else {
    }
    %c0 = arith.constant 0 : index
    %c0_1 = arith.constant 0 : index
    %3 = vector.load %arg2[%c0, %c0_1] : memref<8x256xf32, #tpu.memory_space<vmem>>, vector<8x256xf32>
    %4 = vector.extract_strided_slice %3 {offsets = [0, 0], sizes = [8, 128], strides = [1, 1]} : vector<8x256xf32> to vector<8x128xf32>
    %5 = vector.extract_strided_slice %3 {offsets = [0, 128], sizes = [8, 128], strides = [1, 1]} : vector<8x256xf32> to vector<8x128xf32>
    %6 = arith.addf %4, %5 : vector<8x128xf32>
    %c0_2 = arith.constant 0 : index
    %c0_3 = arith.constant 0 : index
    %c0_4 = arith.constant 0 : index
    %7 = vector.load %arg6[%c0_2, %c0_3, %c0_4] : memref<3x8x128xf32, #tpu.memory_space<vmem>>, vector<1x8x128xf32>
    %8 = vector.shape_cast %7 : vector<1x8x128xf32> to vector<8x128xf32>
    %9 = arith.addf %8, %6 : vector<8x128xf32>
    %c0_5 = arith.constant 0 : index
    %c0_6 = arith.constant 0 : index
    %c0_7 = arith.constant 0 : index
    %10 = vector.load %arg6[%c0_5, %c0_6, %c0_7] : memref<3x8x128xf32, #tpu.memory_space<vmem>>, vector<1x8x128xf32>
    %11 = vector.shape_cast %10 : vector<1x8x128xf32> to vector<8x128xf32>
    %12 = vector.shape_cast %9 : vector<8x128xf32> to vector<1x8x128xf32>
    tpu.vector_store %arg6[%c0_5, %c0_6, %c0_7], %12 {strides = array<i32>} : memref<3x8x128xf32, #tpu.memory_space<vmem>>, vector<1x8x128xf32>,
    %c0_8 = arith.constant 0 : index
    %c0_9 = arith.constant 0 : index
    %13 = vector.load %arg3[%c0_8, %c0_9] : memref<8x256xf32, #tpu.memory_space<vmem>>, vector<8x256xf32>
    %14 = vector.extract_strided_slice %13 {offsets = [0, 0], sizes = [8, 128], strides = [1, 1]} : vector<8x256xf32> to vector<8x128xf32>
    %15 = vector.extract_strided_slice %13 {offsets = [0, 128], sizes = [8, 128], strides = [1, 1]} : vector<8x256xf32> to vector<8x128xf32>
    %16 = arith.addf %14, %15 : vector<8x128xf32>
    %c1 = arith.constant 1 : index
    %c0_10 = arith.constant 0 : index
    %c0_11 = arith.constant 0 : index
    %17 = vector.load %arg6[%c1, %c0_10, %c0_11] : memref<3x8x128xf32, #tpu.memory_space<vmem>>, vector<1x8x128xf32>
    %18 = vector.shape_cast %17 : vector<1x8x128xf32> to vector<8x128xf32>
    %19 = arith.addf %18, %16 : vector<8x128xf32>
    %c1_12 = arith.constant 1 : index
    %c0_13 = arith.constant 0 : index
    %c0_14 = arith.constant 0 : index
    %20 = vector.load %arg6[%c1_12, %c0_13, %c0_14] : memref<3x8x128xf32, #tpu.memory_space<vmem>>, vector<1x8x128xf32>
    %21 = vector.shape_cast %20 : vector<1x8x128xf32> to vector<8x128xf32>
    %22 = vector.shape_cast %19 : vector<8x128xf32> to vector<1x8x128xf32>
    tpu.vector_store %arg6[%c1_12, %c0_13, %c0_14], %22 {strides = array<i32>} : memref<3x8x128xf32, #tpu.memory_space<vmem>>, vector<1x8x128xf32>,
    %c0_15 = arith.constant 0 : index
    %c0_16 = arith.constant 0 : index
    %23 = vector.load %arg4[%c0_15, %c0_16] : memref<8x256xf32, #tpu.memory_space<vmem>>, vector<8x256xf32>
    %24 = vector.extract_strided_slice %23 {offsets = [0, 0], sizes = [8, 128], strides = [1, 1]} : vector<8x256xf32> to vector<8x128xf32>
    %25 = vector.extract_strided_slice %23 {offsets = [0, 128], sizes = [8, 128], strides = [1, 1]} : vector<8x256xf32> to vector<8x128xf32>
    %26 = arith.addf %24, %25 : vector<8x128xf32>
    %c2 = arith.constant 2 : index
    %c0_17 = arith.constant 0 : index
    %c0_18 = arith.constant 0 : index
    %27 = vector.load %arg6[%c2, %c0_17, %c0_18] : memref<3x8x128xf32, #tpu.memory_space<vmem>>, vector<1x8x128xf32>
    %28 = vector.shape_cast %27 : vector<1x8x128xf32> to vector<8x128xf32>
    %29 = arith.addf %28, %26 : vector<8x128xf32>
    %c2_19 = arith.constant 2 : index
    %c0_20 = arith.constant 0 : index
    %c0_21 = arith.constant 0 : index
    %30 = vector.load %arg6[%c2_19, %c0_20, %c0_21] : memref<3x8x128xf32, #tpu.memory_space<vmem>>, vector<1x8x128xf32>
    %31 = vector.shape_cast %30 : vector<1x8x128xf32> to vector<8x128xf32>
    %32 = vector.shape_cast %29 : vector<8x128xf32> to vector<1x8x128xf32>
    tpu.vector_store %arg6[%c2_19, %c0_20, %c0_21], %32 {strides = array<i32>} : memref<3x8x128xf32, #tpu.memory_space<vmem>>, vector<1x8x128xf32>,
    %c0_i32_22 = arith.constant 0 : i32
    %33 = arith.cmpi eq, %arg1, %c0_i32_22 : i32
    %34 = arith.extui %33 : i1 to i32
    %c0_i32_23 = arith.constant 0 : i32
    %35 = arith.cmpi ne, %34, %c0_i32_23 : i32
    scf.if %35 {
      %c0_24 = arith.constant 0 : index
      %c0_25 = arith.constant 0 : index
      %c0_26 = arith.constant 0 : index
      %36 = vector.load %arg6[%c0_24, %c0_25, %c0_26] : memref<3x8x128xf32, #tpu.memory_space<vmem>>, vector<1x8x128xf32>
      %37 = vector.shape_cast %36 : vector<1x8x128xf32> to vector<8x128xf32>
      %cst = arith.constant dense<0.000000e+00> : vector<8xf32>
      %38 = vector.multi_reduction <add>, %37, %cst [1] : vector<8x128xf32> to vector<8xf32>
      %39 = vector.shape_cast %38 : vector<8xf32> to vector<8x1xf32>
      %c0_27 = arith.constant 0 : index
      %c0_28 = arith.constant 0 : index
      %40 = vector.load %arg5[%c0_27, %c0_28] : memref<8x3xf32, #tpu.memory_space<vmem>>, vector<8x1xf32>
      tpu.vector_store %arg5[%c0_27, %c0_28], %39 {strides = array<i32>} : memref<8x3xf32, #tpu.memory_space<vmem>>, vector<8x1xf32>,
      %c1_29 = arith.constant 1 : index
      %c0_30 = arith.constant 0 : index
      %c0_31 = arith.constant 0 : index
      %41 = vector.load %arg6[%c1_29, %c0_30, %c0_31] : memref<3x8x128xf32, #tpu.memory_space<vmem>>, vector<1x8x128xf32>
      %42 = vector.shape_cast %41 : vector<1x8x128xf32> to vector<8x128xf32>
      %cst_32 = arith.constant dense<0.000000e+00> : vector<8xf32>
      %43 = vector.multi_reduction <add>, %42, %cst_32 [1] : vector<8x128xf32> to vector<8xf32>
      %44 = vector.shape_cast %43 : vector<8xf32> to vector<8x1xf32>
      %c0_33 = arith.constant 0 : index
      %c1_34 = arith.constant 1 : index
      %45 = vector.load %arg5[%c0_33, %c1_34] : memref<8x3xf32, #tpu.memory_space<vmem>>, vector<8x1xf32>
      tpu.vector_store %arg5[%c0_33, %c1_34], %44 {strides = array<i32>} : memref<8x3xf32, #tpu.memory_space<vmem>>, vector<8x1xf32>,
      %c2_35 = arith.constant 2 : index
      %c0_36 = arith.constant 0 : index
      %c0_37 = arith.constant 0 : index
      %46 = vector.load %arg6[%c2_35, %c0_36, %c0_37] : memref<3x8x128xf32, #tpu.memory_space<vmem>>, vector<1x8x128xf32>
      %47 = vector.shape_cast %46 : vector<1x8x128xf32> to vector<8x128xf32>
      %cst_38 = arith.constant dense<0.000000e+00> : vector<8xf32>
      %48 = vector.multi_reduction <add>, %47, %cst_38 [1] : vector<8x128xf32> to vector<8xf32>
      %49 = vector.shape_cast %48 : vector<8xf32> to vector<8x1xf32>
      %c0_39 = arith.constant 0 : index
      %c2_40 = arith.constant 2 : index
      %50 = vector.load %arg5[%c0_39, %c2_40] : memref<8x3xf32, #tpu.memory_space<vmem>>, vector<8x1xf32>
      tpu.vector_store %arg5[%c0_39, %c2_40], %49 {strides = array<i32>} : memref<8x3xf32, #tpu.memory_space<vmem>>, vector<8x1xf32>,
    } else {
    }
    return
  }
  func.func @transform_0(%arg0: i32, %arg1: i32) -> (i32, i32) {
    %c0_i32 = arith.constant 0 : i32
    return %arg0, %arg1 : i32, i32
  }
  func.func @transform_1(%arg0: i32, %arg1: i32) -> (i32, i32) {
    %c0_i32 = arith.constant 0 : i32
    return %arg0, %arg1 : i32, i32
  }
  func.func @transform_2(%arg0: i32, %arg1: i32) -> (i32, i32) {
    %c0_i32 = arith.constant 0 : i32
    return %arg0, %arg1 : i32, i32
  }
  func.func @transform_3(%arg0: i32, %arg1: i32) -> (i32, i32) {
    %c0_i32 = arith.constant 0 : i32
    %c0_i32_0 = arith.constant 0 : i32
    return %arg0, %c0_i32 : i32, i32
  }
}

</mosaic_0001>

<bundles_post_ra>
// kernel: tpu_custom_call.1
= control target key start
LH: loop header
LB: loop body
LE: loop exit
PB: predicated region body
PF: predicated region fallthrough
CT: control target
= control target key end

     0   :  { %8 = vsyncpa [#allocation4], 0  ;;  %s226_s0 = inlined_call_operand.hbm [shape: f32[8,256], index: 0, kind: input, shape index: {}]   ;;  %s227_s1 = inlined_call_operand.hbm [shape: f32[8,256], index: 1, kind: input, shape index: {}]   ;;  %s228_s2 = inlined_call_operand.hbm [shape: f32[8,256], index: 2, kind: input, shape index: {}]   ;;  %s229_s3 = inlined_call_operand.vmem [shape: f32[8,3], index: 3, kind: output, shape index: {}]  }
   0x1   :  { %9 = vsyncpa [#allocation6], 0  ;;  %s26_s14 = sshll.u32 %s227_s1, 4  ;;  %s185_s15 = smov [#allocation5]   ;;  %s27_s14 = int_to_ptr.hbm [resolvable:$true] %s26_s14 }
   0x2   :  { %s28_s16 = sshll.u32 %s185_s15, 4  ;;  %s15_s19 = sshll.u32 %s226_s0, 4  ;;  %s29_s16 = int_to_ptr.vmem [resolvable:$true] %s28_s16  ;;  %s16_s19 = int_to_ptr.hbm [resolvable:$true] %s15_s19 }
   0x3   :  { %31 = dma.hbm_to_vmem [thread:$0]  %s27_s14, 256, %s29_s16, [#allocation6]  }
   0x4   :  { %s186_s20 = smov [#allocation3]   ;;  %s37_s24 = sshll.u32 %s228_s2, 4  ;;  %s38_s24 = int_to_ptr.hbm [resolvable:$true] %s37_s24 }
   0x5   :  { %s17_s21 = sshll.u32 %s186_s20, 4  ;;  %s187_s1 = smov [#allocation7]   ;;  %s18_s21 = int_to_ptr.vmem [resolvable:$true] %s17_s21 }
   0x6   :  { %20 = dma.hbm_to_vmem [thread:$0]  %s16_s19, 256, %s18_s21, [#allocation4]  }
   0x7   :  { %s39_s25 = sshll.u32 %s187_s1, 4  ;;  %s40_s25 = int_to_ptr.vmem [resolvable:$true] %s39_s25 }
   0x8   :  { %42 = dma.hbm_to_vmem [thread:$0]  %s38_s24, 256, %s40_s25, [#allocation6]  }
   0x9   :  { %181 = dma.done.wait [#allocation4], 256  }
   0xa   :  { %182 = vsyncadd [#allocation4], 4294967040 }
   0xb   :  { %183 = dma.done.wait [#allocation6], 512  }
   0xc   :  { %184 = vsyncadd [#allocation6], 4294966784  ;;  %v62_v0 = vld [vmem:[#allocation3] sm:$0xff]  ;;  %v63_v1 = vld [vmem:[#allocation3 + $0x8] sm:$0xff]  ;;  %vm88_vm0 = vcmask 7168   ;;  %vm93_vm1 = vcmask 15368  }
   0xd   :  { %v64_v2 = vadd.f32 %v63_v1, %v62_v0  ;;  %v75_v3 = vld [vmem:[#allocation7] sm:$0xff]  ;;  %v76_v4 = vld [vmem:[#allocation7 + $0x8] sm:$0xff]  ;;  %v68_v6 = vld [vmem:[#allocation5] sm:$0xff]  ;;  %vm98_vm2 = vcmask 23568  }
   0xe   :  { %v77_v5 = vadd.f32 %v76_v4, %v75_v3  ;;  %v69_v7 = vld [vmem:[#allocation5 + $0x8] sm:$0xff] }
   0xf   :  { %86 = vadd.xlane.f32.xlu0 %v64_v2  ;;  %v70_v8 = vadd.f32 %v69_v7, %v68_v6 }
  0x10   :  { %96 = vadd.xlane.f32.xlu1 %v77_v5 }
  0x17   :  { %91 = vadd.xlane.f32.xlu0 %v70_v8 }
  0x82   :  { %v87_v9 = vpop.xlane.xlu0 %86 }
  0x83   :  { %89 = vst.msk [vmem:[%s229_s3] sm:$0xff] %vm88_vm0, %v87_v9  ;;  %v97_v10 = vpop.xlane.xlu1 %96 }
  0x8a   :  { %v92_v11 = vpop.xlane.xlu0 %91 }
  0x8b   :  { %94 = vst.msk [vmem:[%s229_s3] sm:$0xff] %vm93_vm1, %v92_v11 }
  0x8c   :  { %99 = vst.msk [vmem:[%s229_s3] sm:$0xff] %vm98_vm2, %v97_v10 }
  0x8d   :  { %104 = vsyncpa [#allocation4], 1 }
  0x8e   :  { %105 = vsyncpa [#allocation6], 1 }

</bundles_post_ra>
